<compile_context>
chip_gen: v7x
topology: tpu7x:2x2x1
jax: 0.10.0
libtpu: 0.0.40
codegen_flags: <defaults>
</compile_context>

<pallas_src>
import jax
import jax.numpy as jnp
from jax.experimental import pallas as pl
from jax.experimental.pallas import tpu as pltpu

D_GENE = 32                  # Config.d_gene
LANES = 128
PACK = LANES // D_GENE       # 4 logical rows packed per 128-lane vreg row
TILE_RP_MAX = 4096           # packed rows per grid step -> ~2 MiB per f32 emb/out tile


def _round_up(x, m):
    return (x + m - 1) // m * m


def cnv_encoding_kernel(emb_ref, cnv_ref, w_ref, out_ref):
    # emb_ref: (TILE_RP, PACK*D)   cnv_ref: (TILE_RP, PACK)   w_ref: (1, D)
    emb = emb_ref[...].astype(jnp.float32)
    c = cnv_ref[...].astype(jnp.float32)       # in-kernel cast (free VPU op)
    w = w_ref[...].astype(jnp.float32)
    parts = []
    for j in range(PACK):                      # static, fully unrolled (PACK == 4)
        ej = emb[:, j * D_GENE:(j + 1) * D_GENE]   # (TILE_RP, D) static lane slice
        cj = c[:, j:j + 1]                          # (TILE_RP, 1) -> lane broadcast
        parts.append(ej + cj * w)                   # broadcast FMA on the VPU
    # single lane-dense 128-wide store (no masked vst.msk partial stores)
    out_ref[...] = jnp.concatenate(parts, axis=-1).astype(out_ref.dtype)


@jax.jit
def cnv_encoding(emb, cnv, w):
    """emb: [B, N, D] float, cnv: [B, N] float, w: [D] float -> [B, N, D]."""
    B, N, D = emb.shape
    assert D == D_GENE, f"expected d_gene={D_GENE}, got {D}"
    out_dtype = jnp.result_type(emb.dtype, cnv.dtype, w.dtype)

    R = B * N
    RP = pl.cdiv(R, PACK)                           # packed rows actually needed
    TILE_RP = min(TILE_RP_MAX, _round_up(RP, 8))    # sublane-aligned row tile
    RP_pad = _round_up(RP, TILE_RP)
    R_pad = RP_pad * PACK

    emb2 = emb.reshape(R, D)
    cnv1 = cnv.reshape(R)
    if R_pad != R:
        emb2 = jnp.pad(emb2, ((0, R_pad - R), (0, 0)))
        cnv1 = jnp.pad(cnv1, (0, R_pad - R))

    emb_p = emb2.reshape(RP_pad, PACK * D)          # lane-dense slab (contiguous reshape)
    cnv_p = cnv1.reshape(RP_pad, PACK)              # small companion slab
    w2 = w.reshape(1, D)

    grid = (RP_pad // TILE_RP,)
    bytes_accessed = (R * D * emb.dtype.itemsize        # emb read
                      + R * cnv.dtype.itemsize          # cnv read
                      + D * w.dtype.itemsize            # w read (once)
                      + R * D * jnp.dtype(out_dtype).itemsize)  # out write

    out_p = pl.pallas_call(
        cnv_encoding_kernel,
        out_shape=jax.ShapeDtypeStruct((RP_pad, PACK * D), out_dtype),
        grid_spec=pl.GridSpec(
            grid=grid,
            in_specs=[
                pl.BlockSpec((TILE_RP, PACK * D), lambda i: (i, 0)),
                pl.BlockSpec((TILE_RP, PACK), lambda i: (i, 0)),
                pl.BlockSpec((1, D), lambda i: (0, 0)),   # constant block -> VMEM-resident
            ],
            out_specs=pl.BlockSpec((TILE_RP, PACK * D), lambda i: (i, 0)),
        ),
        compiler_params=pltpu.CompilerParams(
            dimension_semantics=("parallel",),            # independent row tiles
            vmem_limit_bytes=32 * 1024 * 1024,            # explicit for v5e's 16 MiB default
        ),
        cost_estimate=pl.CostEstimate(
            flops=2 * R * D, transcendentals=0, bytes_accessed=bytes_accessed),
    )(emb_p, cnv_p, w2)

    return out_p.reshape(R_pad, D)[:R].reshape(B, N, D)


if __name__ == "__main__":
    key = jax.random.PRNGKey(0)
    k_emb, k_cnv, k_w = jax.random.split(key, 3)

    B, N, D = 2, 8, D_GENE  # batch=2, genes(seq)=8, d_gene=32
    emb = jax.random.normal(k_emb, (B, N, D), dtype=jnp.float32)
    cnv = jax.random.normal(k_cnv, (B, N), dtype=jnp.float32)
    # nn.Linear(1, d_gene, bias=False).weight has shape (d_gene, 1); keep its column.
    w = jax.random.normal(k_w, (D,), dtype=jnp.float32) * 0.1

    out = jax.block_until_ready(cnv_encoding(emb, cnv, w))

    # reference (plain JAX, mirrors torch semantics)
    ref = emb + cnv[..., None] * w[None, None, :]
    assert out.shape == (B, N, D)
    assert jnp.allclose(out, ref, atol=1e-6, rtol=1e-6)

    print("KERNEL_OK")
</pallas_src>

<mosaic_0001>
module attributes {stable_mosaic.version = 11 : i64} {
  func.func @cnv_encoding_kernel(%arg0: i32, %arg1: memref<8x128xf32, #tpu.memory_space<vmem>>, %arg2: memref<8x4xf32, #tpu.memory_space<vmem>>, %arg3: memref<1x32xf32, #tpu.memory_space<vmem>>, %arg4: memref<8x128xf32, #tpu.memory_space<vmem>>) attributes {dimension_semantics = [#tpu.dimension_semantics<parallel>], iteration_bounds = array<i64: 1>, scalar_prefetch = 0 : i64, scratch_operands = 0 : i64, tpu.core_type = #tpu.core_type<tc>, window_params = [{transform_indices = @transform_0, window_bounds = array<i64: 8, 128>}, {transform_indices = @transform_1, window_bounds = array<i64: 8, 4>}, {pipeline_mode = #tpu.pipeline_mode<synchronous>, transform_indices = @transform_2, window_bounds = array<i64: 1, 32>}, {transform_indices = @transform_3, window_bounds = array<i64: 8, 128>}]} {
    %c0 = arith.constant 0 : index
    %c0_0 = arith.constant 0 : index
    %0 = vector.load %arg1[%c0, %c0_0] : memref<8x128xf32, #tpu.memory_space<vmem>>, vector<8x128xf32>
    %c0_1 = arith.constant 0 : index
    %c0_2 = arith.constant 0 : index
    %1 = vector.load %arg2[%c0_1, %c0_2] : memref<8x4xf32, #tpu.memory_space<vmem>>, vector<8x4xf32>
    %c0_3 = arith.constant 0 : index
    %c0_4 = arith.constant 0 : index
    %2 = vector.load %arg3[%c0_3, %c0_4] : memref<1x32xf32, #tpu.memory_space<vmem>>, vector<1x32xf32>
    %3 = vector.extract_strided_slice %0 {offsets = [0, 0], sizes = [8, 32], strides = [1, 1]} : vector<8x128xf32> to vector<8x32xf32>
    %4 = vector.extract_strided_slice %1 {offsets = [0, 0], sizes = [8, 1], strides = [1, 1]} : vector<8x4xf32> to vector<8x1xf32>
    %5 = vector.broadcast %4 : vector<8x1xf32> to vector<8x32xf32>
    %6 = vector.broadcast %2 : vector<1x32xf32> to vector<8x32xf32>
    %7 = arith.mulf %5, %6 : vector<8x32xf32>
    %8 = arith.addf %3, %7 : vector<8x32xf32>
    %9 = vector.extract_strided_slice %0 {offsets = [0, 32], sizes = [8, 32], strides = [1, 1]} : vector<8x128xf32> to vector<8x32xf32>
    %10 = vector.extract_strided_slice %1 {offsets = [0, 1], sizes = [8, 1], strides = [1, 1]} : vector<8x4xf32> to vector<8x1xf32>
    %11 = vector.broadcast %10 : vector<8x1xf32> to vector<8x32xf32>
    %12 = vector.broadcast %2 : vector<1x32xf32> to vector<8x32xf32>
    %13 = arith.mulf %11, %12 : vector<8x32xf32>
    %14 = arith.addf %9, %13 : vector<8x32xf32>
    %15 = vector.extract_strided_slice %0 {offsets = [0, 64], sizes = [8, 32], strides = [1, 1]} : vector<8x128xf32> to vector<8x32xf32>
    %16 = vector.extract_strided_slice %1 {offsets = [0, 2], sizes = [8, 1], strides = [1, 1]} : vector<8x4xf32> to vector<8x1xf32>
    %17 = vector.broadcast %16 : vector<8x1xf32> to vector<8x32xf32>
    %18 = vector.broadcast %2 : vector<1x32xf32> to vector<8x32xf32>
    %19 = arith.mulf %17, %18 : vector<8x32xf32>
    %20 = arith.addf %15, %19 : vector<8x32xf32>
    %21 = vector.extract_strided_slice %0 {offsets = [0, 96], sizes = [8, 32], strides = [1, 1]} : vector<8x128xf32> to vector<8x32xf32>
    %22 = vector.extract_strided_slice %1 {offsets = [0, 3], sizes = [8, 1], strides = [1, 1]} : vector<8x4xf32> to vector<8x1xf32>
    %23 = vector.broadcast %22 : vector<8x1xf32> to vector<8x32xf32>
    %24 = vector.broadcast %2 : vector<1x32xf32> to vector<8x32xf32>
    %25 = arith.mulf %23, %24 : vector<8x32xf32>
    %26 = arith.addf %21, %25 : vector<8x32xf32>
    %27 = tpu.concatenate %8, %14, %20, %26 in 1 : vector<8x32xf32>, vector<8x32xf32>, vector<8x32xf32>, vector<8x32xf32> -> vector<8x128xf32>
    %c0_5 = arith.constant 0 : index
    %c0_6 = arith.constant 0 : index
    %28 = vector.load %arg4[%c0_5, %c0_6] : memref<8x128xf32, #tpu.memory_space<vmem>>, vector<8x128xf32>
    tpu.vector_store %arg4[%c0_5, %c0_6], %27 {strides = array<i32>} : memref<8x128xf32, #tpu.memory_space<vmem>>, vector<8x128xf32>,
    return
  }
  func.func @transform_0(%arg0: i32) -> (i32, i32) {
    %c0_i32 = arith.constant 0 : i32
    %c0_i32_0 = arith.constant 0 : i32
    return %arg0, %c0_i32 : i32, i32
  }
  func.func @transform_1(%arg0: i32) -> (i32, i32) {
    %c0_i32 = arith.constant 0 : i32
    %c0_i32_0 = arith.constant 0 : i32
    return %arg0, %c0_i32 : i32, i32
  }
  func.func @transform_2(%arg0: i32) -> (i32, i32) {
    %c0_i32 = arith.constant 0 : i32
    %c0_i32_0 = arith.constant 0 : i32
    %c0_i32_1 = arith.constant 0 : i32
    return %c0_i32, %c0_i32_0 : i32, i32
  }
  func.func @transform_3(%arg0: i32) -> (i32, i32) {
    %c0_i32 = arith.constant 0 : i32
    %c0_i32_0 = arith.constant 0 : i32
    return %arg0, %c0_i32 : i32, i32
  }
}

</mosaic_0001>

<bundles_post_ra>
// kernel: cnv_encoding.1
= control target key start
LH: loop header
LB: loop body
LE: loop exit
PB: predicated region body
PF: predicated region fallthrough
CT: control target
= control target key end

     0   :  { %v84_v0 = vmov 1   ;;  %v85_v2 = vmov 3   ;;  %v86_v3 = vmov 2   ;;  %v87_v4 = vmov 0   ;;  %s88_s16 = smov 32   ;;  %s90_s17 = smov 64   ;;  %s123_s1 = inlined_call_operand.vmem [shape: f32[8,4], index: 1, kind: input, shape index: {}]   ;;  %s124_s2 = inlined_call_operand.vmem [shape: f32[1,32], index: 2, kind: input, shape index: {}]   ;;  %s125_s0 = inlined_call_operand.vmem [shape: f32[8,128], index: 0, kind: input, shape index: {}]   ;;  %s126_s3 = inlined_call_operand.vmem [shape: f32[8,128], index: 3, kind: output, shape index: {}]  }
   0x1   :  { %79 = vset.pattern.permute.xlu0 %v84_v0  ;;  %v15_v1 = vld [vmem:[%s123_s1] sm:$0xff]  ;;  %81 = vset.pattern.permute.xlu1 %v85_v2  ;;  %s89_s1 = smov 96   ;;  %vm60_vm0 = vcmask 261120   ;;  %vm62_vm1 = vcmask 523264   ;;  %vm64_vm2 = vcmask 785408  }
   0x2   :  { %31 = vperm.xlu0 %79, %v15_v1   ;;  %51 = vperm.xlu1 %81, %v15_v1   ;;  %v71_v5 = vld [vmem:[%s124_s2] ss:$0 sm:$0xff] }
   0x3   :  { %v14_v14 = vld [vmem:[%s125_s0] sm:$0xff] }
   0x6   :  { %80 = vset.pattern.permute.xlu0 %v86_v3  ;;  %82 = vset.pattern.permute.xlu1 %v87_v4 }
   0x7   :  { %41 = vperm.xlu0 %80, %v15_v1   ;;  %19 = vperm.xlu1 %82, %v15_v1  }
   0xb   :  { %83 = vset.pattern.permute.xlu0 %v85_v2 }
  0x81   :  { %v32_v6 = vpop.permute.xlu0 %31  ;;  %v52_v7 = vpop.permute.xlu1 %51 }
  0x82   :  { %v34_v8 = vmul.f32 %v71_v5, %v32_v6  ;;  %v54_v9 = vmul.f32 %v71_v5, %v52_v7 }
  0x84   :  { %36 = vrot.lane.b32.xlu1 %v34_v8, %s88_s16 }
  0x86   :  { %v42_v10 = vpop.permute.xlu0 %41  ;;  %v20_v12 = vpop.permute.xlu1 %19 }
  0x87   :  { %v44_v11 = vmul.f32 %v71_v5, %v42_v10  ;;  %v28_v13 = vmul.f32 %v71_v5, %v20_v12 }
  0x88   :  { %56 = vrot.lane.b32.xlu1 %v54_v9, %s89_s1 }
  0x89   :  { %46 = vrot.lane.b32.xlu0 %v44_v11, %s90_s17  ;;  %v29_v16 = vadd.f32 %v28_v13, %v14_v14 }
  0xf6   :  { %v37_v15 = vpop.permute.xlu1 %36 }
  0xf7   :  { %v39_v17 = vadd.f32 %v37_v15, %v14_v14 }
  0xf9   :  { %v61_v22 = vsel %vm60_vm0, %v29_v16, %v39_v17 }
  0xfa   :  { %v57_v18 = vpop.permute.xlu1 %56 }
  0xfb   :  { %v47_v19 = vpop.permute.xlu0 %46  ;;  %v59_v20 = vadd.f32 %v57_v18, %v14_v14 }
  0xfc   :  { %v49_v21 = vadd.f32 %v47_v19, %v14_v14 }
  0xfe   :  { %v63_v23 = vsel %vm62_vm1, %v61_v22, %v49_v21 }
  0xff   :  { %v65_v24 = vsel %vm64_vm2, %v63_v23, %v59_v20 }
 0x100   :  { %66 = vst [vmem:[%s126_s3] sm:$0xff] %v65_v24 }

</bundles_post_ra>
